<compile_context>
chip_gen: v6e
topology: v6e:2x2x1
jax: 0.10.0
libtpu: 0.0.40
codegen_flags: <defaults>
</compile_context>

<pallas_src>
import functools

import jax
import jax.numpy as jnp
from jax.experimental import pallas as pl
from jax.experimental.pallas import tpu as pltpu


def _quant_rmsnorm_kernel(x_ref, w_ref, gate_ref, dlt_ref, o_ref, *, eps):
    x = x_ref[...].astype(jnp.float32)        # (TB, D)
    w = w_ref[...].astype(jnp.float32)        # (1, D)
    gate_x = gate_ref[...]                    # (1, L) f32: [lut_x[:-1], +inf]
    delta_y = dlt_ref[...]                    # (1, L) f32: suffix deltas of lut_y

    # rms = mean(x**2, -1, keepdim) + eps  (f32 accumulation even for bf16 I/O)
    rms = jnp.mean(x * x, axis=-1, keepdims=True) + eps      # (TB, 1)

    # Fused bucketize (== torch.bucketize right=False) + clamp + LUT gather in
    # one (TB, L) compare/select/lane-reduce:
    #   lut_y[clip(searchsorted_left(lut_x, rms), 0, L-1)]
    #     == sum_j [gate_x[j] >= rms] * delta_y[j]
    contrib = jnp.where(gate_x >= rms, delta_y, 0.0)         # (TB, L)
    rsqrt = jnp.sum(contrib, axis=-1, keepdims=True)         # (TB, 1)

    # normed = x * rsqrt ; out = normed * weight
    o_ref[...] = (x * rsqrt * w).astype(o_ref.dtype)


def quant_rmsnorm(x, weight, lut_x, lut_y, eps, *, block_rows=None,
                  vmem_limit_bytes=48 * 1024 * 1024):
    """x: (B, D); weight: (D,); lut_x (sorted ascending), lut_y: (L,)."""
    B, D = x.shape
    L = lut_x.shape[0]
    io_bytes = jnp.dtype(x.dtype).itemsize

    # --- pick the batch tile (rows per grid step) ----------------------------
    # Budget ~24 MiB for the per-step working set (x/out double-buffered in the
    # I/O dtype + f32 working copies + the (TB, L) gated row). This fits the
    # physical VMEM of every generation with headroom; tune block_rows /
    # vmem_limit_bytes per chip (v6e can go bigger, v7x has only 64 MiB).
    if block_rows is None:
        budget = 24 * 1024 * 1024
        per_row = 4 * D * io_bytes + 2 * D * 4 + L * 4
        block_rows = max(8, min(1024, budget // max(1, per_row)))
    if block_rows >= B:
        tb = B                                   # full dim: no (8,·) constraint
    else:
        tb = max(8, (block_rows // 8) * 8)       # multiple of 8 sublanes

    # --- host-side LUT preprocessing (cheap, done once per call) -------------
    lx = lut_x.astype(jnp.float32)
    ly = lut_y.astype(jnp.float32)
    # gate_x[j] = lut_x[j] for j < L-1, +inf for j = L-1 (always-on base lane)
    gate = jnp.concatenate(
        [lx[:-1], jnp.full((1,), jnp.inf, jnp.float32)]).reshape(1, L)
    # delta_y[j] = lut_y[j] - lut_y[j+1] for j < L-1 ; delta_y[L-1] = lut_y[L-1]
    delta = jnp.concatenate([ly[:-1] - ly[1:], ly[-1:]]).reshape(1, L)
    w2 = weight.reshape(1, D)

    kernel = functools.partial(_quant_rmsnorm_kernel, eps=float(eps))
    grid = (pl.cdiv(B, tb),)

    return pl.pallas_call(
        kernel,
        out_shape=jax.ShapeDtypeStruct((B, D), x.dtype),
        grid=grid,
        in_specs=[
            pl.BlockSpec((tb, D), lambda i: (i, 0)),   # x: tiled over batch rows
            pl.BlockSpec((1, D), lambda i: (0, 0)),    # weight: VMEM-resident
            pl.BlockSpec((1, L), lambda i: (0, 0)),    # gate_x: VMEM-resident
            pl.BlockSpec((1, L), lambda i: (0, 0)),    # delta_y: VMEM-resident
        ],
        out_specs=pl.BlockSpec((tb, D), lambda i: (i, 0)),
        compiler_params=pltpu.CompilerParams(
            dimension_semantics=("parallel",),         # megacore on v7x
            vmem_limit_bytes=int(vmem_limit_bytes),
        ),
    )(x, w2, gate, delta)


def quant_rmsnorm_ref(x, weight, lut_x, lut_y, eps):
    # Pure-JAX reference mirroring the PyTorch forward.
    xf = x.astype(jnp.float32)
    rms = jnp.mean(xf ** 2, axis=-1, keepdims=True) + eps
    idx = jnp.searchsorted(lut_x, rms, side="left")    # == torch.bucketize
    idx = jnp.clip(idx, 0, lut_y.shape[0] - 1)
    rsqrt_approx = lut_y[idx]                          # (B, 1)
    normed = xf * rsqrt_approx
    return (normed * weight[None, :].astype(jnp.float32)).astype(x.dtype)


if __name__ == "__main__":
    LUT_BITS = 8
    EPS = 1e-5
    L = 2 ** LUT_BITS

    key = jax.random.PRNGKey(0)
    kx1, kw, kx2 = jax.random.split(key, 3)

    # build_rsqrt_lut(bits=8): uniform (sorted) grid + rsqrt values.
    lut_x = jnp.linspace(1e-5, 10.0, L, dtype=jnp.float32)
    lut_y = 1.0 / jnp.sqrt(lut_x)

    # --- Case 1: module-like small shape (single full block) -----------------
    B1, D1 = 8, 32
    x1 = jax.random.normal(kx1, (B1, D1), dtype=jnp.float32)
    weight = 1.0 + 0.1 * jax.random.normal(kw, (D1,), dtype=jnp.float32)

    out1 = jax.block_until_ready(quant_rmsnorm(x1, weight, lut_x, lut_y, EPS))
    ref1 = quant_rmsnorm_ref(x1, weight, lut_x, lut_y, EPS)
    assert out1.shape == (B1, D1) and out1.dtype == x1.dtype
    assert jnp.allclose(out1, ref1, atol=1e-5, rtol=1e-5), "mismatch (case 1)"

    # --- Case 2: multi-step batch grid with a partial last block -------------
    B2, D2 = 20, 32
    x2 = jax.random.normal(kx2, (B2, D2), dtype=jnp.float32)
    out2 = jax.block_until_ready(
        quant_rmsnorm(x2, weight, lut_x, lut_y, EPS, block_rows=8))
    ref2 = quant_rmsnorm_ref(x2, weight, lut_x, lut_y, EPS)
    assert out2.shape == (B2, D2)
    assert jnp.allclose(out2, ref2, atol=1e-5, rtol=1e-5), "mismatch (case 2)"

    print("KERNEL_OK")
</pallas_src>

<mosaic_0001>
module attributes {stable_mosaic.version = 11 : i64} {
  func.func @_quant_rmsnorm_kernel(%arg0: i32, %arg1: memref<8x32xf32, #tpu.memory_space<vmem>>, %arg2: memref<1x32xf32, #tpu.memory_space<vmem>>, %arg3: memref<1x256xf32, #tpu.memory_space<vmem>>, %arg4: memref<1x256xf32, #tpu.memory_space<vmem>>, %arg5: memref<8x32xf32, #tpu.memory_space<vmem>>) attributes {dimension_semantics = [#tpu.dimension_semantics<parallel>], iteration_bounds = array<i64: 1>, scalar_prefetch = 0 : i64, scratch_operands = 0 : i64, tpu.core_type = #tpu.core_type<tc>, window_params = [{transform_indices = @transform_0, window_bounds = array<i64: 8, 32>}, {pipeline_mode = #tpu.pipeline_mode<synchronous>, transform_indices = @transform_1, window_bounds = array<i64: 1, 32>}, {pipeline_mode = #tpu.pipeline_mode<synchronous>, transform_indices = @transform_2, window_bounds = array<i64: 1, 256>}, {pipeline_mode = #tpu.pipeline_mode<synchronous>, transform_indices = @transform_3, window_bounds = array<i64: 1, 256>}, {transform_indices = @transform_4, window_bounds = array<i64: 8, 32>}]} {
    %c0 = arith.constant 0 : index
    %c0_0 = arith.constant 0 : index
    %0 = vector.load %arg1[%c0, %c0_0] : memref<8x32xf32, #tpu.memory_space<vmem>>, vector<8x32xf32>
    %c0_1 = arith.constant 0 : index
    %c0_2 = arith.constant 0 : index
    %1 = vector.load %arg2[%c0_1, %c0_2] : memref<1x32xf32, #tpu.memory_space<vmem>>, vector<1x32xf32>
    %c0_3 = arith.constant 0 : index
    %c0_4 = arith.constant 0 : index
    %2 = vector.load %arg3[%c0_3, %c0_4] : memref<1x256xf32, #tpu.memory_space<vmem>>, vector<1x256xf32>
    %c0_5 = arith.constant 0 : index
    %c0_6 = arith.constant 0 : index
    %3 = vector.load %arg4[%c0_5, %c0_6] : memref<1x256xf32, #tpu.memory_space<vmem>>, vector<1x256xf32>
    %4 = arith.mulf %0, %0 : vector<8x32xf32>
    %cst = arith.constant dense<0.000000e+00> : vector<8xf32>
    %5 = vector.multi_reduction <add>, %4, %cst [1] : vector<8x32xf32> to vector<8xf32>
    %6 = vector.shape_cast %5 : vector<8xf32> to vector<8x1xf32>
    %cst_7 = arith.constant 3.200000e+01 : f32
    %7 = vector.broadcast %cst_7 : f32 to vector<8x1xf32>
    %8 = arith.divf %6, %7 : vector<8x1xf32>
    %cst_8 = arith.constant 9.99999974E-6 : f32
    %9 = vector.broadcast %cst_8 : f32 to vector<8x1xf32>
    %10 = arith.addf %8, %9 : vector<8x1xf32>
    %11 = vector.broadcast %2 : vector<1x256xf32> to vector<8x256xf32>
    %12 = vector.broadcast %10 : vector<8x1xf32> to vector<8x256xf32>
    %13 = arith.cmpf oge, %11, %12 : vector<8x256xf32>
    %cst_9 = arith.constant 0.000000e+00 : f32
    %14 = vector.shape_cast %3 : vector<1x256xf32> to vector<1x256xf32>
    %15 = vector.broadcast %14 : vector<1x256xf32> to vector<8x256xf32>
    %16 = vector.broadcast %cst_9 : f32 to vector<8x256xf32>
    %17 = arith.select %13, %15, %16 : vector<8x256xi1>, vector<8x256xf32>
    %cst_10 = arith.constant dense<0.000000e+00> : vector<8xf32>
    %18 = vector.multi_reduction <add>, %17, %cst_10 [1] : vector<8x256xf32> to vector<8xf32>
    %19 = vector.shape_cast %18 : vector<8xf32> to vector<8x1xf32>
    %20 = vector.broadcast %19 : vector<8x1xf32> to vector<8x32xf32>
    %21 = arith.mulf %0, %20 : vector<8x32xf32>
    %22 = vector.broadcast %1 : vector<1x32xf32> to vector<8x32xf32>
    %23 = arith.mulf %21, %22 : vector<8x32xf32>
    %c0_11 = arith.constant 0 : index
    %c0_12 = arith.constant 0 : index
    %24 = vector.load %arg5[%c0_11, %c0_12] : memref<8x32xf32, #tpu.memory_space<vmem>>, vector<8x32xf32>
    tpu.vector_store %arg5[%c0_11, %c0_12], %23 {strides = array<i32>} : memref<8x32xf32, #tpu.memory_space<vmem>>, vector<8x32xf32>,
    return
  }
  func.func @transform_0(%arg0: i32) -> (i32, i32) {
    %c0_i32 = arith.constant 0 : i32
    %c0_i32_0 = arith.constant 0 : i32
    return %arg0, %c0_i32 : i32, i32
  }
  func.func @transform_1(%arg0: i32) -> (i32, i32) {
    %c0_i32 = arith.constant 0 : i32
    %c0_i32_0 = arith.constant 0 : i32
    %c0_i32_1 = arith.constant 0 : i32
    return %c0_i32, %c0_i32_0 : i32, i32
  }
  func.func @transform_2(%arg0: i32) -> (i32, i32) {
    %c0_i32 = arith.constant 0 : i32
    %c0_i32_0 = arith.constant 0 : i32
    %c0_i32_1 = arith.constant 0 : i32
    return %c0_i32, %c0_i32_0 : i32, i32
  }
  func.func @transform_3(%arg0: i32) -> (i32, i32) {
    %c0_i32 = arith.constant 0 : i32
    %c0_i32_0 = arith.constant 0 : i32
    %c0_i32_1 = arith.constant 0 : i32
    return %c0_i32, %c0_i32_0 : i32, i32
  }
  func.func @transform_4(%arg0: i32) -> (i32, i32) {
    %c0_i32 = arith.constant 0 : i32
    %c0_i32_0 = arith.constant 0 : i32
    return %arg0, %c0_i32 : i32, i32
  }
}

</mosaic_0001>

<bundles_post_ra>
// kernel: tpu_custom_call.1
= control target key start
LH: loop header
LB: loop body
LE: loop exit
PB: predicated region body
PF: predicated region fallthrough
CT: control target
= control target key end

     0   :  { %9 = vsyncpa [#allocation3], 0  ;;  %s186_s0 = inlined_call_operand.hbm [shape: f32[8,32], index: 0, kind: input, shape index: {}]   ;;  %s187_s1 = inlined_call_operand.vmem [shape: f32[1,32], index: 1, kind: input, shape index: {}]   ;;  %s188_s2 = inlined_call_operand.vmem [shape: f32[1,256], index: 2, kind: input, shape index: {}]   ;;  %s189_s3 = inlined_call_operand.vmem [shape: f32[1,256], index: 3, kind: input, shape index: {}]   ;;  %s190_s4 = inlined_call_operand.hbm [shape: f32[8,32], index: 4, kind: output, shape index: {}]  }
   0x1   :  { %10 = vsyncpa [#allocation4], 0  ;;  %s142_s15 = smov [#allocation2]  }
   0x2   :  { %s17_s16 = sshll.u32 %s142_s15, 4  ;;  %s18_s16 = int_to_ptr.vmem [resolvable:$true] %s17_s16 }
   0x3   :  { %s106_s17 = scalar_lea.vmem %s18_s16, 128  ;;  %p111_p1 = scmp.lt.s32.totalorder %s18_s16, %s18_s16 }
   0x4   :  { %p107_p0 = scmp.ne.s32.totalorder %s18_s16, %s106_s17  ;;  %p112_p2 = scmp.lt.s32.totalorder %s106_s17, %s106_s17 }
   0x6   :  { %p113_p3 = por %p112_p2, %p111_p1 }
   0x8   :  { %p114_p4 = pnand %p113_p3, %p107_p0 }
   0xa   :  { %117 = shalt.err (!%p114_p4)
}
   0xb   :  { %20 = dma.hbm_to_vmem [thread:$0]  %s186_s0, 128, %s18_s16, [#allocation3]  }
   0xc   :  { %138 = dma.done.wait [#allocation3], 128  }
   0xd   :  { %139 = vsyncadd [#allocation3], 4294967168  ;;  %v30_v0 = vld [vmem:[#allocation2] sm:$0xff]  ;;  %vm35_vm0 = vcmask 261120   ;;  %v43_v3 = vlaneseq }
   0xe   :  { %v34_v1 = vmul.f32 %v30_v0, %v30_v0  ;;  %v32_v7 = vld [vmem:[%s188_s2] sm:$0x3]  ;;  %s143_s2 = smov [#allocation5]  }
   0xf   :  { %v44_v4 = vshrl.u32 %v43_v3, 7  ;;  %v33_v8 = vld [vmem:[%s189_s3] sm:$0x3]  ;;  %s86_s3 = sshll.u32 %s143_s2, 4  ;;  %s87_s3 = int_to_ptr.vmem [resolvable:$true] %s86_s3 }
  0x10   :  { %v36_v2 = vsel %vm35_vm0, %v34_v1, 0.0  ;;  %v95_v19 = vld [vmem:[%s187_s1] ss:$0 sm:$0xff]  ;;  %s118_s25 = scalar_lea.vmem %s87_s3, 128  ;;  %p123_p6 = scmp.lt.s32.totalorder %s87_s3, %s87_s3 }
  0x11   :  { %37 = vadd.xlane.f32.xlu0 %v36_v2  ;;  %v45_v5 = vsub.s32 0, %v44_v4  ;;  %v49_v6 = vsub.s32 1, %v44_v4  ;;  %p119_p5 = scmp.ne.s32.totalorder %s87_s3, %s118_s25  ;;  %p124_p7 = scmp.lt.s32.totalorder %s118_s25, %s118_s25 }
  0x13   :  { %v46_v10 = vrot.slane %v32_v7, %v45_v5  ;;  %v50_v11 = vrot.slane %v32_v7, %v49_v6  ;;  %v59_v13 = vrot.slane %v33_v8, %v45_v5  ;;  %v63_v14 = vrot.slane %v33_v8, %v49_v6  ;;  %p125_p8 = por %p124_p7, %p123_p6 }
  0x15   :  { %p126_p9 = pnand %p125_p8, %p119_p5 }
  0x9a   :  { %v38_v9 = vpop.xlane.xlu0 %37 }
  0x9b   :  { %v40_v12 = vmul.f32 0.03125, %v38_v9 }
  0x9d   :  { %v41_v15 = vadd.f32 1e-05, %v40_v12 }
  0x9f   :  { %vm53_vm1 = vcmp.ge.f32.partialorder %v46_v10, %v41_v15  ;;  %vm54_vm2 = vcmp.ge.f32.partialorder %v50_v11, %v41_v15 }
  0xa0   :  { %v66_v16 = vsel %vm53_vm1, %v59_v13, 0.0  ;;  %v67_v17 = vsel %vm54_vm2, %v63_v14, 0.0 }
  0xa1   :  { %v68_v18 = vadd.f32 %v67_v17, %v66_v16 }
  0xa3   :  { %69 = vadd.xlane.f32.xlu0 %v68_v18 }
 0x12c   :  { %v70_v20 = vpop.xlane.xlu0 %69 }
 0x12d   :  { %v71_v21 = vmul.f32 %v70_v20, %v30_v0 }
 0x12f   :  { %v78_v22 = vmul.f32 %v95_v19, %v71_v21 }
 0x131   :  { %79 = vst.msk [vmem:[#allocation5] sm:$0xff] %vm35_vm0, %v78_v22 }
 0x132   :  { %129 = shalt.err (!%p126_p9)
}
 0x133   :  { %89 = dma.vmem_to_hbm [thread:$0]  %s87_s3, 128, %s190_s4, [#allocation4]  }
 0x134   :  { %140 = dma.done.wait [#allocation4], 128  }
 0x135   :  { %141 = vsyncadd [#allocation4], 4294967168 }
 0x136   :  { %93 = vsyncpa [#allocation3], 1 }
 0x137   :  { %94 = vsyncpa [#allocation4], 1 }

</bundles_post_ra>
